<compile_context>
chip_gen: v5e
topology: v5e:2x2
jax: 0.10.0
libtpu: 0.0.40
codegen_flags: <defaults>
</compile_context>

<pallas_src>
import functools

import jax
import jax.numpy as jnp
from jax import lax
from jax.experimental import pallas as pl
from jax.experimental.pallas import tpu as pltpu


# --------------------------------------------------------------------------------------
# Kernel bodies
# --------------------------------------------------------------------------------------
def _attention_body(q_ref, k_ref, v_ref, m_ref, o_ref, w_ref, *, scale, compute_dtype):
    # q_ref: (1, Tq, D)   k_ref / v_ref: (1, Lk, D)
    # m_ref: (1, 1 or Tq, Lk) int8 or None
    # o_ref: (1, Tq, D)   w_ref: (1, Tq, Lk)
    compute_dtype = jnp.dtype(compute_dtype)
    f32 = jnp.dtype(jnp.float32)

    q = q_ref[0]
    k = k_ref[0]
    v = v_ref[0]
    # Only cast when actually needed (bf16 inputs go to the MXU untouched).
    if q.dtype != compute_dtype:
        q = q.astype(compute_dtype)
    if k.dtype != compute_dtype:
        k = k.astype(compute_dtype)
    if v.dtype != compute_dtype:
        v = v.astype(compute_dtype)

    if compute_dtype == f32:
        # Fold 1/sqrt(D) into the small (Tq, D) query block (cheaper than scaling scores).
        q = q * jnp.float32(scale)

    # scores = Q @ K^T  -- contract D on both operands, f32 accumulation on the MXU.
    scores = lax.dot_general(q, k, (((1,), (1,)), ((), ())),
                             preferred_element_type=jnp.float32)
    if compute_dtype != f32:
        # Keep the scale in f32 so the bf16 operands are fed to the MXU uncopied.
        scores = scores * jnp.float32(scale)

    if m_ref is not None:
        # int8 mask tile, shape (1, Lk) or (Tq, Lk); broadcasts against (Tq, Lk) scores.
        scores = jnp.where(m_ref[0] == 0, jnp.float32(-1e9), scores)

    # Numerically-stable softmax over the key axis, fused epilogue.
    mx = jnp.max(scores, axis=-1, keepdims=True)          # (Tq, 1)
    p = jnp.exp(scores - mx)                               # EUP
    l = jnp.sum(p, axis=-1, keepdims=True)                 # (Tq, 1)
    inv_l = pl.reciprocal(l, approx=True)                  # EUP slot, ~free
    w = p * inv_l                                          # (Tq, Lk) f32

    # TODO(synk): training-mode dropout (nn.Dropout) on `w` is not applied here; this
    # implements the eval/inference forward where dropout is the identity.

    if jnp.dtype(w_ref.dtype) == compute_dtype and compute_dtype != f32:
        # Store the low-precision weights once and reuse the same tensor for PV.
        w_lp = w.astype(compute_dtype)
        w_ref[0] = w_lp
        w_pv = w_lp
    else:
        w_ref[0] = w.astype(w_ref.dtype)
        w_pv = w if compute_dtype == f32 else w.astype(compute_dtype)

    out = lax.dot_general(w_pv, v, (((1,), (0,)), ((), ())),
                          preferred_element_type=jnp.float32)  # (Tq, D)
    o_ref[0] = out.astype(o_ref.dtype)


def _kernel_no_mask(q_ref, k_ref, v_ref, o_ref, w_ref, *, scale, compute_dtype):
    _attention_body(q_ref, k_ref, v_ref, None, o_ref, w_ref,
                    scale=scale, compute_dtype=compute_dtype)


def _kernel_with_mask(q_ref, k_ref, v_ref, m_ref, o_ref, w_ref, *, scale, compute_dtype):
    _attention_body(q_ref, k_ref, v_ref, m_ref, o_ref, w_ref,
                    scale=scale, compute_dtype=compute_dtype)


# --------------------------------------------------------------------------------------
# Tiling / VMEM helpers
# --------------------------------------------------------------------------------------
def _vmem_capacity_bytes():
    """Physical per-core VMEM (v5e/v6e: 128 MiB, v7x: 64 MiB); safe fallback."""
    try:
        info = pltpu.get_tpu_info()
        cap = getattr(info, "vmem_capacity_bytes", None)
        if cap:
            return int(cap)
    except Exception:
        pass
    return 128 * 1024 * 1024


def _pick_q_tile(lq, lk, d, *, q_bytes, kv_bytes, o_bytes, w_bytes,
                 mask_bytes_per_row, budget_bytes, cap=1024):
    """Largest multiple-of-8 q tile whose estimated VMEM footprint fits the budget."""
    # Fixed cost: K and V blocks, double-buffered.
    fixed = 4 * lk * d * kv_bytes
    # Per query-row cost: q/o tiles (x2 buffers), w tile (x2), mask rows (x2),
    # plus ~2 (Tq, Lk) f32 intermediates (scores / probs) of compiler scratch.
    per_row = (2 * d * (q_bytes + o_bytes)
               + 2 * lk * w_bytes
               + 2 * mask_bytes_per_row
               + 2 * lk * 4)
    avail = max(budget_bytes - fixed, 0)
    tq = min(cap, max(lq, 1), avail // max(per_row, 1))
    tq = max(8, (int(tq) // 8) * 8)
    return tq, fixed, per_row


# --------------------------------------------------------------------------------------
# Public wrapper
# --------------------------------------------------------------------------------------
def attention(query, key, value, mask=None, *, dropout_p=0.0,
              low_precision_matmul=False, weights_dtype=None):
    """query: (B, Lq, D); key/value: (B, Lk, D); mask broadcastable to (B, Lq, Lk)
    (positions where mask == 0 are masked).  Returns (output, attention_weights).

    low_precision_matmul: when inputs are f32, run the two MXU matmuls in bf16.
    weights_dtype: optional dtype for the returned attention weights (e.g. bf16
    to halve the dominant (B, Lq, Lk) HBM writeback); defaults to query.dtype.
    """
    if dropout_p != 0.0:
        raise NotImplementedError(
            "training-mode dropout is not implemented in the Pallas kernel")

    query = jnp.asarray(query)
    key = jnp.asarray(key)
    value = jnp.asarray(value)

    B, Lq, D = query.shape
    Bk, Lk, Dk = key.shape
    assert key.shape == value.shape and Bk == B and Dk == D

    out_dtype = jnp.dtype(query.dtype)
    w_dtype = jnp.dtype(weights_dtype) if weights_dtype is not None else out_dtype

    bf16 = jnp.dtype(jnp.bfloat16)
    if (jnp.dtype(query.dtype) == bf16 and jnp.dtype(key.dtype) == bf16
            and jnp.dtype(value.dtype) == bf16):
        compute_dtype = bf16               # native bf16 inputs -> full-rate MXU
    elif low_precision_matmul:
        compute_dtype = bf16               # opt-in precision knob for f32 inputs
    else:
        compute_dtype = jnp.dtype(jnp.float32)

    scale = 1.0 / float(D) ** 0.5

    # ---- normalize the mask: keep it broadcastable, int8; never build (B,Lq,Lk) i32 ----
    mask_i8 = None
    mask_q_full = False
    mask_b_full = False
    if mask is not None:
        m = jnp.asarray(mask)
        if m.ndim < 3:
            m = m.reshape((1,) * (3 - m.ndim) + m.shape)
        mb, mq, mk = m.shape
        assert mb in (1, B) and mq in (1, Lq), "mask not broadcastable to (B, Lq, Lk)"
        if mk == 1 and Lk != 1:
            m = jnp.broadcast_to(m, (mb, mq, Lk))     # key-dim broadcast: tiny, expand here
        else:
            assert mk == Lk, "mask not broadcastable to (B, Lq, Lk)"
        mask_i8 = (m != 0).astype(jnp.int8)
        mask_q_full = (mq != 1)
        mask_b_full = (mb != 1)

    # ---- VMEM-budget-aware q tile ----
    cap = _vmem_capacity_bytes()
    budget = int(0.70 * cap)
    itm = lambda dt: jnp.dtype(dt).itemsize
    tq, fixed, per_row = _pick_q_tile(
        Lq, Lk, D,
        q_bytes=itm(query.dtype), kv_bytes=itm(key.dtype),
        o_bytes=itm(out_dtype), w_bytes=itm(w_dtype),
        mask_bytes_per_row=(Lk if mask_q_full else 0),
        budget_bytes=budget)

    # Pad Lq to a multiple of the tile (handles awkward Lq without full-Lq tiles).
    lq_pad = ((Lq + tq - 1) // tq) * tq
    q_in = query
    if lq_pad != Lq:
        q_in = jnp.pad(query, ((0, 0), (0, lq_pad - Lq), (0, 0)))
        if mask_i8 is not None and mask_q_full:
            mask_i8 = jnp.pad(mask_i8, ((0, 0), (0, lq_pad - Lq), (0, 0)),
                              constant_values=1)

    grid = (B, lq_pad // tq)   # batch outermost: K/V block is reused across the q-tile loop

    q_spec = pl.BlockSpec((1, tq, D), lambda b, i: (b, i, 0))
    kv_spec = pl.BlockSpec((1, Lk, D), lambda b, i: (b, 0, 0))
    o_spec = pl.BlockSpec((1, tq, D), lambda b, i: (b, i, 0))
    w_spec = pl.BlockSpec((1, tq, Lk), lambda b, i: (b, i, 0))

    out_shape = (
        jax.ShapeDtypeStruct((B, lq_pad, D), out_dtype),
        jax.ShapeDtypeStruct((B, lq_pad, Lk), w_dtype),
    )

    # VMEM limit: actual footprint with headroom, capped at ~75% of physical VMEM
    # (never ask for all of it on v7x's 64 MiB per TensorCore).
    footprint = fixed + per_row * tq + (2 << 20)
    vmem_limit = int(min(0.75 * cap, max(32 << 20, 1.5 * footprint)))

    compiler_params = pltpu.CompilerParams(
        dimension_semantics=("parallel", "parallel"),
        vmem_limit_bytes=vmem_limit,
    )

    if mask_i8 is None:
        out, w = pl.pallas_call(
            functools.partial(_kernel_no_mask, scale=scale, compute_dtype=compute_dtype),
            out_shape=out_shape,
            grid_spec=pltpu.PrefetchScalarGridSpec(
                num_scalar_prefetch=0,
                grid=grid,
                in_specs=[q_spec, kv_spec, kv_spec],
                out_specs=[o_spec, w_spec],
            ),
            compiler_params=compiler_params,
        )(q_in, key, value)
    else:
        mq_blk = tq if mask_q_full else 1

        def m_index(b, i, _bfull=mask_b_full, _qfull=mask_q_full):
            return (b if _bfull else 0, i if _qfull else 0, 0)

        m_spec = pl.BlockSpec((1, mq_blk, Lk), m_index)
        out, w = pl.pallas_call(
            functools.partial(_kernel_with_mask, scale=scale, compute_dtype=compute_dtype),
            out_shape=out_shape,
            grid_spec=pltpu.PrefetchScalarGridSpec(
                num_scalar_prefetch=0,
                grid=grid,
                in_specs=[q_spec, kv_spec, kv_spec, m_spec],
                out_specs=[o_spec, w_spec],
            ),
            compiler_params=compiler_params,
        )(q_in, key, value, mask_i8)

    if lq_pad != Lq:
        out = out[:, :Lq, :]
        w = w[:, :Lq, :]
    return out, w


# --------------------------------------------------------------------------------------
# Self-test
# --------------------------------------------------------------------------------------
if __name__ == "__main__":
    key0 = jax.random.PRNGKey(0)
    kq, kk, kv, km, kmf = jax.random.split(key0, 5)

    B, Lq, Lk, D = 2, 8, 8, 32
    q = jax.random.normal(kq, (B, Lq, D), dtype=jnp.float32)
    k = jax.random.normal(kk, (B, Lk, D), dtype=jnp.float32)
    v = jax.random.normal(kv, (B, Lk, D), dtype=jnp.float32)
    # broadcastable mask (B, 1, Lk): some keys masked out per batch
    mask_bq = (jax.random.uniform(km, (B, 1, Lk)) > 0.3).astype(jnp.int32)
    # full (B, Lq, Lk) mask
    mask_full = (jax.random.uniform(kmf, (B, Lq, Lk)) > 0.3).astype(jnp.int32)

    def reference(q, k, v, mask=None):
        scores = jnp.einsum("bqd,bkd->bqk", q.astype(jnp.float32),
                            k.astype(jnp.float32)) / jnp.sqrt(jnp.float32(D))
        if mask is not None:
            scores = jnp.where(jnp.broadcast_to(mask, scores.shape) == 0, -1e9, scores)
        w = jax.nn.softmax(scores, axis=-1)
        return jnp.einsum("bqk,bkd->bqd", w, v.astype(jnp.float32)), w

    # Tolerance accounts for MXU matmul precision and the approx EUP reciprocal.
    ATOL = RTOL = 1e-2

    # --- unmasked (f32) ---
    out, w = jax.block_until_ready(attention(q, k, v))
    ref_out, ref_w = reference(q, k, v)
    assert jnp.allclose(w, ref_w, atol=ATOL, rtol=RTOL), "weights mismatch (no mask)"
    assert jnp.allclose(out, ref_out, atol=ATOL, rtol=RTOL), "output mismatch (no mask)"

    # --- broadcastable (B, 1, Lk) mask ---
    out_m, w_m = jax.block_until_ready(attention(q, k, v, mask=mask_bq))
    ref_out_m, ref_w_m = reference(q, k, v, mask_bq)
    assert jnp.allclose(w_m, ref_w_m, atol=ATOL, rtol=RTOL), "weights mismatch (bcast mask)"
    assert jnp.allclose(out_m, ref_out_m, atol=ATOL, rtol=RTOL), "output mismatch (bcast mask)"

    # --- full (B, Lq, Lk) mask (shipped as int8) ---
    out_f, w_f = jax.block_until_ready(attention(q, k, v, mask=mask_full))
    ref_out_f, ref_w_f = reference(q, k, v, mask_full)
    assert jnp.allclose(w_f, ref_w_f, atol=ATOL, rtol=RTOL), "weights mismatch (full mask)"
    assert jnp.allclose(out_f, ref_out_f, atol=ATOL, rtol=RTOL), "output mismatch (full mask)"

    # --- native bf16 inputs (bf16 MXU operands, f32 accumulation) ---
    qb, kb, vb = q.astype(jnp.bfloat16), k.astype(jnp.bfloat16), v.astype(jnp.bfloat16)
    out_b, w_b = jax.block_until_ready(attention(qb, kb, vb, mask=mask_bq))
    ref_out_b, ref_w_b = reference(qb, kb, vb, mask_bq)
    assert jnp.allclose(w_b.astype(jnp.float32), ref_w_b, atol=3e-2, rtol=3e-2), \
        "weights mismatch (bf16)"
    assert jnp.allclose(out_b.astype(jnp.float32), ref_out_b, atol=3e-2, rtol=3e-2), \
        "output mismatch (bf16)"

    print("KERNEL_OK")
</pallas_src>

<mosaic_0001>
module attributes {stable_mosaic.version = 11 : i64} {
  func.func @_kernel_no_mask(%arg0: i32, %arg1: i32, %arg2: memref<1x8x32xf32, #tpu.memory_space<vmem>>, %arg3: memref<1x8x32xf32, #tpu.memory_space<vmem>>, %arg4: memref<1x8x32xf32, #tpu.memory_space<vmem>>, %arg5: memref<1x8x32xf32, #tpu.memory_space<vmem>>, %arg6: memref<1x8x8xf32, #tpu.memory_space<vmem>>) attributes {dimension_semantics = [#tpu.dimension_semantics<parallel>, #tpu.dimension_semantics<parallel>], iteration_bounds = array<i64: 2, 1>, scalar_prefetch = 0 : i64, scratch_operands = 0 : i64, tpu.core_type = #tpu.core_type<tc>, window_params = [{transform_indices = @transform_0, window_bounds = array<i64: 1, 8, 32>}, {transform_indices = @transform_1, window_bounds = array<i64: 1, 8, 32>}, {transform_indices = @transform_2, window_bounds = array<i64: 1, 8, 32>}, {transform_indices = @transform_3, window_bounds = array<i64: 1, 8, 32>}, {transform_indices = @transform_4, window_bounds = array<i64: 1, 8, 8>}]} {
    %c0 = arith.constant 0 : index
    %c0_0 = arith.constant 0 : index
    %c0_1 = arith.constant 0 : index
    %0 = vector.load %arg2[%c0, %c0_0, %c0_1] : memref<1x8x32xf32, #tpu.memory_space<vmem>>, vector<1x8x32xf32>
    %1 = vector.shape_cast %0 : vector<1x8x32xf32> to vector<8x32xf32>
    %c0_2 = arith.constant 0 : index
    %c0_3 = arith.constant 0 : index
    %c0_4 = arith.constant 0 : index
    %2 = vector.load %arg3[%c0_2, %c0_3, %c0_4] : memref<1x8x32xf32, #tpu.memory_space<vmem>>, vector<1x8x32xf32>
    %3 = vector.shape_cast %2 : vector<1x8x32xf32> to vector<8x32xf32>
    %c0_5 = arith.constant 0 : index
    %c0_6 = arith.constant 0 : index
    %c0_7 = arith.constant 0 : index
    %4 = vector.load %arg4[%c0_5, %c0_6, %c0_7] : memref<1x8x32xf32, #tpu.memory_space<vmem>>, vector<1x8x32xf32>
    %5 = vector.shape_cast %4 : vector<1x8x32xf32> to vector<8x32xf32>
    %cst = arith.constant 0.176776692 : f32
    %6 = vector.broadcast %cst : f32 to vector<8x32xf32>
    %7 = arith.mulf %1, %6 : vector<8x32xf32>
    %cst_8 = arith.constant dense<0.000000e+00> : vector<8x8xf32>
    %8 = tpu.matmul %7, %3, %cst_8 {dimension_numbers = #tpu.dot_dimension_numbers<[1], [1], [0], [0], [0, 0, 1, 0], [], []>} : vector<8x32xf32>, vector<8x32xf32>, vector<8x8xf32> -> vector<8x8xf32>
    %cst_9 = arith.constant dense<0xFF800000> : vector<8xf32>
    %9 = vector.multi_reduction <maximumf>, %8, %cst_9 [1] : vector<8x8xf32> to vector<8xf32>
    %10 = vector.shape_cast %9 : vector<8xf32> to vector<8x1xf32>
    %11 = vector.broadcast %10 : vector<8x1xf32> to vector<8x8xf32>
    %12 = arith.subf %8, %11 : vector<8x8xf32>
    %13 = math.exp %12 : vector<8x8xf32>
    %cst_10 = arith.constant dense<0.000000e+00> : vector<8xf32>
    %14 = vector.multi_reduction <add>, %13, %cst_10 [1] : vector<8x8xf32> to vector<8xf32>
    %15 = vector.shape_cast %14 : vector<8xf32> to vector<8x1xf32>
    %16 = tpu.reciprocal %15 {approx = true} : vector<8x1xf32> -> vector<8x1xf32>
    %17 = vector.broadcast %16 : vector<8x1xf32> to vector<8x8xf32>
    %18 = arith.mulf %13, %17 : vector<8x8xf32>
    %c0_11 = arith.constant 0 : index
    %c0_12 = arith.constant 0 : index
    %c0_13 = arith.constant 0 : index
    %19 = vector.load %arg6[%c0_11, %c0_12, %c0_13] : memref<1x8x8xf32, #tpu.memory_space<vmem>>, vector<1x8x8xf32>
    %20 = vector.shape_cast %19 : vector<1x8x8xf32> to vector<8x8xf32>
    %21 = vector.shape_cast %18 : vector<8x8xf32> to vector<1x8x8xf32>
    tpu.vector_store %arg6[%c0_11, %c0_12, %c0_13], %21 {strides = array<i32>} : memref<1x8x8xf32, #tpu.memory_space<vmem>>, vector<1x8x8xf32>,
    %cst_14 = arith.constant dense<0.000000e+00> : vector<8x32xf32>
    %22 = tpu.matmul %18, %5, %cst_14 {dimension_numbers = #tpu.dot_dimension_numbers<[1], [0], [0], [1], [0, 0, 1, 1], [], []>} : vector<8x8xf32>, vector<8x32xf32>, vector<8x32xf32> -> vector<8x32xf32>
    %c0_15 = arith.constant 0 : index
    %c0_16 = arith.constant 0 : index
    %c0_17 = arith.constant 0 : index
    %23 = vector.load %arg5[%c0_15, %c0_16, %c0_17] : memref<1x8x32xf32, #tpu.memory_space<vmem>>, vector<1x8x32xf32>
    %24 = vector.shape_cast %23 : vector<1x8x32xf32> to vector<8x32xf32>
    %25 = vector.shape_cast %22 : vector<8x32xf32> to vector<1x8x32xf32>
    tpu.vector_store %arg5[%c0_15, %c0_16, %c0_17], %25 {strides = array<i32>} : memref<1x8x32xf32, #tpu.memory_space<vmem>>, vector<1x8x32xf32>,
    return
  }
  func.func @transform_0(%arg0: i32, %arg1: i32) -> (i32, i32, i32) {
    %c0_i32 = arith.constant 0 : i32
    %c0_i32_0 = arith.constant 0 : i32
    return %arg0, %arg1, %c0_i32 : i32, i32, i32
  }
  func.func @transform_1(%arg0: i32, %arg1: i32) -> (i32, i32, i32) {
    %c0_i32 = arith.constant 0 : i32
    %c0_i32_0 = arith.constant 0 : i32
    %c0_i32_1 = arith.constant 0 : i32
    return %arg0, %c0_i32, %c0_i32_0 : i32, i32, i32
  }
  func.func @transform_2(%arg0: i32, %arg1: i32) -> (i32, i32, i32) {
    %c0_i32 = arith.constant 0 : i32
    %c0_i32_0 = arith.constant 0 : i32
    %c0_i32_1 = arith.constant 0 : i32
    return %arg0, %c0_i32, %c0_i32_0 : i32, i32, i32
  }
  func.func @transform_3(%arg0: i32, %arg1: i32) -> (i32, i32, i32) {
    %c0_i32 = arith.constant 0 : i32
    %c0_i32_0 = arith.constant 0 : i32
    return %arg0, %arg1, %c0_i32 : i32, i32, i32
  }
  func.func @transform_4(%arg0: i32, %arg1: i32) -> (i32, i32, i32) {
    %c0_i32 = arith.constant 0 : i32
    %c0_i32_0 = arith.constant 0 : i32
    return %arg0, %arg1, %c0_i32 : i32, i32, i32
  }
}

</mosaic_0001>

<bundles_post_ra>
// kernel: tpu_custom_call.1
= control target key start
LH: loop header
LB: loop body
LE: loop exit
PB: predicated region body
PF: predicated region fallthrough
CT: control target
= control target key end

     0   :  { %s1103_s0 = inlined_call_operand.hbm [shape: f32[2,8,32], index: 0, kind: input, shape index: {}]   ;;  %s1104_s1 = inlined_call_operand.hbm [shape: f32[2,8,32], index: 1, kind: input, shape index: {}]   ;;  %s1105_s2 = inlined_call_operand.hbm [shape: f32[2,8,32], index: 2, kind: input, shape index: {}]   ;;  %s1106_s3 = inlined_call_operand.hbm [shape: f32[2,8,32], index: 3, kind: output, shape index: {0}]   ;;  %s1107_s4 = inlined_call_operand.hbm [shape: f32[2,8,8], index: 4, kind: output, shape index: {1}]  }
   0x1   :  { %1111 = sst [smem:[#allocation19_spill]] %s1104_s1 }
   0x2   :  { %10 = vsyncpa [#allocation3], 0 }
   0x3   :  { %12 = vsyncpa [#allocation3 + $0x1], 0 }
   0x4   :  { %13 = vsyncpa [#allocation6], 0 }
   0x5   :  { %15 = vsyncpa [#allocation6 + $0x1], 0 }
   0x6   :  { %16 = vsyncpa [#allocation4], 0 }
   0x7   :  { %18 = vsyncpa [#allocation4 + $0x1], 0 }
   0x8   :  { %19 = vsyncpa [#allocation10], 0 }
   0x9   :  { %21 = vsyncpa [#allocation10 + $0x1], 0  ;;  %s923_s15 = smov 0   ;;  %s925_s16 = smov 0  }
   0xa   :  { %s927_s17 = smov 0   ;;  %s929_s18 = smov 0  }
   0xb   :  { %s931_s19 = smov 0   ;;  %s933_s20 = smov 0  }
   0xc LB: > { %1112 = sst [smem:[#allocation15_spill]] %s884_s17  ;;  %s954_s21 = sadd.s32 4294967295, %s896_s20   ;;  %s896_s20 = sphi %s933_s20, %s27_s20   ;;  %s892_s19 = sphi %s931_s19, %s1126_s19   ;;  %s888_s18 = sphi %s929_s18, %s1125_s18   ;;  %s884_s17 = sphi %s927_s17, %s1124_s17   ;;  %s880_s16 = sphi %s925_s16, %s1128_s16   ;;  %s876_s15 = sphi %s923_s15, %s1127_s15  }
   0xd   : > { %1113 = sst [smem:[#allocation16_spill]] %s892_s19  ;;  %s583_s22 = sadd.s32 4294967294, %s896_s20  }
   0xe   : > { %s39_s23 = sadd.s32 1, %s892_s19  ;;  %s48_s24 = sadd.s32 1, %s884_s17 }
   0xf   : > { %p41_p0 = scmp.ge.s32.totalorder %s39_s23, 2  ;;  %p55_p1 = scmp.ne.s32.totalorder %s884_s17, %s880_s16 }
  0x10   : > { %p56_p2 = scmp.eq.s32.totalorder %s896_s20, 0  ;;  %p61_p3 = scmp.ne.s32.totalorder %s880_s16, %s876_s15 }
  0x11   : > { %s1130_s23 = smov (%p41_p0, %s39_s23), 0  ;;  %p62_p5 = scmp.eq.s32.totalorder %s954_s21, 0 }
  0x12   : > { %1114 = sst [smem:[#allocation17_spill]] %s1130_s23  ;;  %p966_p4 = por %p56_p2, %p55_p1 }
  0x13   : > { %s43_s26 = ssub.s32 %s892_s19, %s1130_s23  ;;  %p139_p6 = scmp.eq.s32.totalorder %s954_s21, 1 }
  0x14   : > { %p46_p7 = scmp.eq.s32.totalorder %s43_s26, 0  ;;  %p974_p8 = por %p62_p5, %p61_p3 }
  0x15   : > { %p978_p9 = por %p139_p6, %p55_p1  ;;  %p145_p10 = scmp.eq.s32.totalorder %s583_s22, 1 }
  0x16   : > { %s983_s29 = scalar_select %p46_p7, %s884_s17, %s48_s24  }
  0x17   : > { %p985_p11 = por %p145_p10, %p61_p3  ;;  %p585_p12 = scmp.ge.s32.totalorder %s896_s20, 2 }
  0x18   : > { %1118 = sst [smem:[#allocation18_spill]] %s983_s29  ;;  %p634_p13 = scmp.lt.s32.totalorder %s896_s20, 2 }
  0x19   : > { %s193_s5 = sand.u32 1, %s884_s17   ;;  %s587_s7 = sshll.u32 %s892_s19, 3 }
  0x1a   : > { %s586_s6 = sshll.u32 %s193_s5, 3  ;;  %p995_p0 = pnand %p634_p13, %p966_p4 }
  0x1b   : > { %s213_s9 = sand.u32 1, %s896_s20   ;;  %s1121_s1 = sld [smem:[#allocation19_spill]] }
  0x1c   : > { %s217_s14 = scalar_lea.vmem [#allocation5], %s586_s6  ;;  %s214_s24 = scalar_lea.sflag [#allocation6], %s213_s9 }
  0x1d   : > { %s225_s22 = sshll.u32 %s217_s14, 4  ;;  %p592_p1 = scmp.ge.s32.totalorder %s896_s20, 1  ;;  %s226_s22 = int_to_ptr.vmem [resolvable:$true] %s225_s22 }
  0x1e   : > { %p249_p2 = scmp.lt.s32.totalorder %s896_s20, 3  ;;  %s202_s10 = scalar_lea.hbm %s1103_s0, %s587_s7 }
  0x1f   : > { %s204_s11 = sshll.u32 %s202_s10, 4  ;;  %s194_s14 = scalar_lea.sflag [#allocation3], %s193_s5  ;;  %s205_s11 = int_to_ptr.hbm [resolvable:$true] %s204_s11 }
  0x20   : > { %p1007_p3 = pnand %p592_p1, %p249_p2  ;;  %s236_s29 = scalar_lea.vmem [#allocation7], %s586_s6 }
  0x21   : > { %s221_s12 = scalar_lea.hbm %s1121_s1, %s587_s7  ;;  %s244_s17 = sshll.u32 %s236_s29, 4  ;;  %s245_s17 = int_to_ptr.vmem [resolvable:$true] %s244_s17 }
  0x22   : > { %s223_s13 = sshll.u32 %s221_s12, 4  ;;  %s197_s12 = scalar_lea.vmem [#allocation2], %s586_s6  ;;  %s224_s13 = int_to_ptr.hbm [resolvable:$true] %s223_s13 }
  0x23   : > { %623 = dma.hbm_to_vmem [thread:$0]  (!%p995_p0), %s224_s13, 128, %s226_s22, %s214_s24  }
  0x24   : > { %s206_s1 = sshll.u32 %s197_s12, 4  ;;  %s240_s22 = scalar_lea.hbm %s1105_s2, %s587_s7  ;;  %s207_s1 = int_to_ptr.vmem [resolvable:$true] %s206_s1 }
  0x25   : > { %620 = dma.hbm_to_vmem [thread:$0]  (!%p995_p0), %s205_s11, 128, %s207_s1, %s194_s14  }
  0x26   : > { %s242_s19 = sshll.u32 %s240_s22, 4  ;;  %253 = sbr.rel (%p1007_p3) target bundleno = 560 (0x230), region = 32  ;;  %s243_s19 = int_to_ptr.hbm [resolvable:$true] %s242_s19 }
  0x27   : > { %626 = dma.hbm_to_vmem [thread:$0]  (!%p995_p0), %s243_s19, 128, %s245_s17, %s214_s24  }
  0x28   : > { %s1024_s23 = sand.u32 (!%p1007_p3), 1, %s880_s16  }
  0x29   : > { %s1027_s1 = sshll.u32 (!%p1007_p3), %s1024_s23, 3  ;;  %s256_s5 = scalar_lea.sflag (!%p1007_p3), [#allocation3], %s1024_s23 }
  0x2a   : > { %s259_s7 = scalar_lea.vmem (!%p1007_p3), [#allocation2], %s1027_s1 }
  0x2b   : > { %859 = dma.done.wait (%p974_p8), %s256_s5, 128  }
  0x2c   : > { %861 = vsyncadd (%p974_p8), %s256_s5, 4294967168  ;;  %s265_s17 = sand.u32 1, %s954_s21   ;;  %s269_s29 = scalar_lea.vmem [#allocation5], %s1027_s1 }
  0x2d   : > { %s266_s19 = scalar_lea.sflag [#allocation6], %s265_s17 }
  0x2e   : > { %863 = dma.done.wait (%p974_p8), %s266_s19, 256  }
  0x2f   : > { %865 = vsyncadd (%p974_p8), %s266_s19, 4294967040  ;;  %vm324_vm0 = vcmask 261120   ;;  %v321_v0 = vld [vmem:[%s269_s29] sm:$0xff]  ;;  %v320_v1 = vld [vmem:[%s259_s7] sm:$0xff]  ;;  %vm351_vm1 = vcmask 64512   ;;  %s279_s21 = scalar_lea.vmem [#allocation7], %s1027_s1 }
  0x30   : > { %598 = vmatpush.xpose.msk.msra.mxu0 %vm324_vm0, %v321_v0  ;;  %v323_v2 = vmul.f32 0.17677669, %v320_v1  ;;  %v322_v10 = vld [vmem:[%s279_s21] sm:$0xff]  ;;  %s603_s27 = sshll.u32 %s888_s18, 3  ;;  %s319_s25 = scalar_lea.vmem [#allocation9], %s1027_s1 }
  0x31   : > { %382 = vmatpush.msra.mxu1 %v322_v10  ;;  %s420_s24 = scalar_lea.hbm %s1107_s4, %s603_s27  ;;  %s422_s26 = sshll.u32 %s319_s25, 4  ;;  %s423_s26 = int_to_ptr.vmem [resolvable:$true] %s422_s26 }
  0x32   : > { %s424_s10 = sshll.u32 %s420_s24, 4  ;;  %s394_s11 = scalar_lea.sflag [#allocation10], %s1024_s23  ;;  %s425_s10 = int_to_ptr.hbm [resolvable:$true] %s424_s10 }
  0x33   : > { %599 = vmatmul.msk.f32.vlgmr.msra.gmra.mxu0 %vm324_vm0, %v323_v2  ;;  %s792_s12 = sshra.s32 %s425_s10, 4  ;;  %s798_s13 = scalar_lea.hbm %s1107_s4, 16  ;;  %s793_s12 = int_to_ptr.hbm [resolvable:$true] %s792_s12 }
  0x34   : > { %s794_s18 = scalar_lea.hbm %s793_s12, 8  ;;  %p799_p7 = scmp.lt.s32.totalorder %s793_s12, %s1107_s4 }
  0x35   : > { %p795_p4 = scmp.ne.s32.totalorder %s793_s12, %s794_s18  ;;  %p800_p8 = scmp.lt.s32.totalorder %s798_s13, %s794_s18 }
  0x37   : > { %p796_p5 = pnand %p795_p4, %p978_p9  ;;  %p801_p10 = por %p800_p8, %p799_p7 }
  0x39   : > { %p797_p6 = pneg %p796_p5 }
  0x3b   : > { %p802_p13 = pnand %p801_p10, %p797_p6 }
  0xb0   : > { %v348_v3 = vpop.f32.mrf.mxu0 }
  0xb1   : > { %v352_v4 = vsel %vm351_vm1, %v348_v3, -inf }
  0xb2   : > { %353 = vmax.xlane.f32.xlu0 %v352_v4 }
 0x125   : > { %v354_v5 = vpop.xlane.xlu0 %353 }
 0x126   : > { %v355_v6 = vsub.f32 %v348_v3, %v354_v5 }
 0x128   : > { %v356_v7 = vmul.f32 1.442695, %v355_v6 }
 0x12a   : > { %684 = vpow2.f32 %v356_v7 }
 0x130   : > { %v685_v8 = vpop.eup %684 }
 0x131   : > { %v358_v9 = vsel %vm351_vm1, %v685_v8, 0.0 }
 0x132   : > { %359 = vadd.xlane.f32.xlu0 %v358_v9 }
 0x1a5   : > { %v360_v11 = vpop.xlane.xlu0 %359 }
 0x1a6   : > { %686 = vrcp.f32 %v360_v11 }
 0x1ac   : > { %v687_v12 = vpop.eup %686 }
 0x1ad   : > { %v362_v13 = vmul.f32 %v687_v12, %v685_v8 }
 0x1af   : > { %600 = vmatmul.msk.f32.vlgmr.msra.gmra.mxu1 %vm351_vm1, %v362_v13  ;;  %363 = vst.msk [vmem:[%s319_s25] sm:$0xff] %vm351_vm1, %v362_v13 }
 0x1b0   : > { %805 = shalt.err (!%p802_p13)
}
 0x1b1   : > { %614 = dma.vmem_to_hbm [thread:$0]  (%p978_p9), %s423_s26, 128, %s425_s10, %s394_s11  }
 0x1b2   : > { %s405_s19 = scalar_lea.hbm %s1106_s3, %s603_s27  ;;  %s312_s29 = scalar_lea.vmem [#allocation8], %s1027_s1 }
 0x1b3   : > { %s407_s21 = sshll.u32 %s312_s29, 4  ;;  %s409_s6 = sshll.u32 %s405_s19, 4  ;;  %s408_s21 = int_to_ptr.vmem [resolvable:$true] %s407_s21  ;;  %s410_s6 = int_to_ptr.hbm [resolvable:$true] %s409_s6 }
 0x1b4   : > { %s389_s8 = scalar_lea.sflag [#allocation4], %s1024_s23  ;;  %s820_s24 = sshra.s32 %s410_s6, 4  ;;  %s821_s24 = int_to_ptr.hbm [resolvable:$true] %s820_s24 }
 0x1b5   : > { %s822_s25 = scalar_lea.hbm %s821_s24, 8  ;;  %s826_s27 = scalar_lea.hbm %s1106_s3, 16 }
 0x1b6   : > { %p823_p0 = scmp.ne.s32.totalorder %s821_s24, %s822_s25  ;;  %p827_p3 = scmp.lt.s32.totalorder %s821_s24, %s1106_s3 }
 0x1b7   : > { %p828_p4 = scmp.lt.s32.totalorder %s826_s27, %s822_s25 }
 0x1b8   : > { %p824_p1 = pnand %p823_p0, %p978_p9 }
 0x1b9   : > { %p829_p5 = por %p828_p4, %p827_p3 }
 0x1ba   : > { %p825_p2 = pneg %p824_p1 }
 0x1bc   : > { %p830_p6 = pnand %p829_p5, %p825_p2 }
 0x22c   : > { %v384_v14 = vpop.f32.mrf.mxu1 }
 0x22d   : > { %387 = vst.msk [vmem:[%s312_s29] sm:$0xff] %vm324_vm0, %v384_v14 }
 0x22e   : > { %833 = shalt.err (!%p830_p6)
}
 0x22f   : > { %613 = dma.vmem_to_hbm [thread:$0]  (%p978_p9), %s408_s21, 128, %s410_s6, %s389_s8  }
 0x230 PF: > { %s436_s23 = sand.u32 1, %s876_s15   ;;  %p628_p7 = pnand %p585_p12, %p985_p11 }
 0x231   : > { %s437_s12 = scalar_lea.sflag [#allocation4], %s436_s23 }
 0x232   : > { %p629_p8 = pneg %p628_p7 }
 0x234   : > { %867 = dma.done.wait (%p629_p8), %s437_s12, 128  }
 0x235   : > { %869 = vsyncadd (%p629_p8), %s437_s12, 4294967168  ;;  %s447_s18 = scalar_lea.sflag [#allocation10], %s436_s23 }
 0x236   : > { %871 = dma.done.wait (%p629_p8), %s447_s18, 128  }
 0x237   : > { %873 = vsyncadd (%p629_p8), %s447_s18, 4294967168  ;;  %s27_s20 = sadd.s32 1, %s896_s20   ;;  %s1123_s28 = sld [smem:[#allocation15_spill]] }
 0x238   : > { %p24_p10 = scmp.ge.s32.totalorder %s27_s20, 4   ;;  %s1124_s17 = sld [smem:[#allocation18_spill]] }
 0x239   : > { %s1125_s18 = sld [smem:[#allocation16_spill]]  ;;  %s1127_s15 = smov %s880_s16 }
 0x23a   : > { %s1126_s19 = sld [smem:[#allocation17_spill]]  ;;  %26 = sbr.rel (!%p24_p10) target bundleno = 12 (0xc), region = 118 }
 0x23d   : > { %s1128_s16 = smov %s1123_s28 }
 0x23f   :  { %453 = vsyncpa [#allocation3], 1 }
 0x240   :  { %455 = vsyncpa [#allocation3 + $0x1], 1 }
 0x241   :  { %456 = vsyncpa [#allocation6], 1 }
 0x242   :  { %458 = vsyncpa [#allocation6 + $0x1], 1 }
 0x243   :  { %459 = vsyncpa [#allocation4], 1 }
 0x244   :  { %461 = vsyncpa [#allocation4 + $0x1], 1 }
 0x245   :  { %462 = vsyncpa [#allocation10], 1 }
 0x246   :  { %464 = vsyncpa [#allocation10 + $0x1], 1 }

</bundles_post_ra>
